<compile_context>
chip_gen: v5e
topology: v5e:2x2
jax: 0.10.0
libtpu: 0.0.40
codegen_flags: <defaults>
</compile_context>

<pallas_src>
import jax
import jax.numpy as jnp
from jax.experimental import pallas as pl
from jax.experimental.pallas import tpu as pltpu


def fused_conv_block_kernel(x_ref, m1_ref, s1_ref, m2_ref, s2_ref, o_ref,
                            xpad1, xpad2):
    """Fused (conv3x3 + BN + ReLU) x 2 for one image.

    x_ref : (1, H, W*Cin)          flat-row input tile
    m1_ref: (3, W*Cin,  W*Cout)    banded weights, layer 1 (BN scale folded)
    s1_ref: (1, W*Cout)            per-lane shift, layer 1
    m2_ref: (3, W*Cout, W*Cout)    banded weights, layer 2 (BN scale folded)
    s2_ref: (1, W*Cout)            per-lane shift, layer 2
    o_ref : (1, H, W*Cout)         flat-row output tile (lane dense)
    xpad1 : VMEM (H+2, W*Cin)      H-halo scratch for layer 1
    xpad2 : VMEM (H+2, W*Cout)     H-halo scratch for layer 2 (holds y1)
    """
    H = o_ref.shape[1]
    WCin = x_ref.shape[2]
    WCout = o_ref.shape[2]

    zero1 = jnp.zeros((1, WCin), jnp.float32)
    zero2 = jnp.zeros((1, WCout), jnp.float32)

    # ---- layer 1: conv3x3 + BN + ReLU --------------------------------------
    xpad1[0:1, :] = zero1                       # top halo row
    xpad1[H + 1:H + 2, :] = zero1               # bottom halo row
    xpad1[1:H + 1, :] = x_ref[0].astype(jnp.float32)

    acc1 = jnp.zeros((H, WCout), jnp.float32)
    for ky in range(3):                         # 3 lane-dense MXU matmuls
        acc1 += jnp.dot(xpad1[ky:ky + H, :], m1_ref[ky],
                        preferred_element_type=jnp.float32)
    y1 = jnp.maximum(acc1 + s1_ref[...], 0.0)

    # ---- layer 2: conv3x3 + BN + ReLU (input never leaves VMEM) ------------
    xpad2[0:1, :] = zero2
    xpad2[H + 1:H + 2, :] = zero2
    xpad2[1:H + 1, :] = y1

    acc2 = jnp.zeros((H, WCout), jnp.float32)
    for ky in range(3):
        acc2 += jnp.dot(xpad2[ky:ky + H, :], m2_ref[ky],
                        preferred_element_type=jnp.float32)
    y2 = jnp.maximum(acc2 + s2_ref[...], 0.0)

    o_ref[...] = y2[None].astype(o_ref.dtype)


def fold_bn_into_banded_weights(w_hwio, scale, shift, W):
    """Build the banded block-Toeplitz matmul weights for one conv layer.

    Returns
      M          : (3, W*Cin, W*Cout) with
                   M[ky, u*Cin+ci, w*Cout+co] = w[ky, u-w+1, ci, co]*scale[co]
                   (zero when u-w+1 is outside [0,3) -> width padding built in)
      shift_flat : (1, W*Cout) with shift_flat[0, w*Cout+co] = shift[co]
    """
    KH, KW, Cin, Cout = w_hwio.shape
    w_scaled = (w_hwio * scale[None, None, None, :]).astype(jnp.float32)

    u = jnp.arange(W)[:, None]                  # source column
    wi = jnp.arange(W)[None, :]                 # output column
    kx = u - wi + (KW // 2)                     # tap index along width
    valid = (kx >= 0) & (kx < KW)
    kx_c = jnp.clip(kx, 0, KW - 1)

    blocks = w_scaled[:, kx_c]                  # (KH, W, W, Cin, Cout)
    blocks = blocks * valid[None, :, :, None, None].astype(jnp.float32)
    M = jnp.transpose(blocks, (0, 1, 3, 2, 4)).reshape(KH, W * Cin, W * Cout)

    shift_flat = jnp.tile(shift.astype(jnp.float32), W).reshape(1, W * Cout)
    return M, shift_flat


def conv_block_forward(x_nchw, params1, params2):
    """Full conv_block forward: (conv3x3+BN+ReLU) x 2. Input/output NCHW."""
    N, Cin, H, W = x_nchw.shape
    w1, scale1, shift1 = params1
    w2, scale2, shift2 = params2
    Cout = w1.shape[-1]

    # NCHW -> NHWC -> flat rows (N, H, W*Cin); channels fastest on lanes.
    x_flat = jnp.transpose(x_nchw, (0, 2, 3, 1)).reshape(N, H, W * Cin)

    m1, s1 = fold_bn_into_banded_weights(w1, scale1, shift1, W)
    m2, s2 = fold_bn_into_banded_weights(w2, scale2, shift2, W)

    out_flat = pl.pallas_call(
        fused_conv_block_kernel,
        out_shape=jax.ShapeDtypeStruct((N, H, W * Cout), x_nchw.dtype),
        grid_spec=pltpu.PrefetchScalarGridSpec(
            num_scalar_prefetch=0,
            grid=(N,),
            in_specs=[
                pl.BlockSpec((1, H, W * Cin), lambda n: (n, 0, 0)),
                pl.BlockSpec((3, W * Cin, W * Cout), lambda n: (0, 0, 0)),
                pl.BlockSpec((1, W * Cout), lambda n: (0, 0)),
                pl.BlockSpec((3, W * Cout, W * Cout), lambda n: (0, 0, 0)),
                pl.BlockSpec((1, W * Cout), lambda n: (0, 0)),
            ],
            out_specs=pl.BlockSpec((1, H, W * Cout), lambda n: (n, 0, 0)),
            scratch_shapes=[
                pltpu.VMEM((H + 2, W * Cin), jnp.float32),
                pltpu.VMEM((H + 2, W * Cout), jnp.float32),
            ],
        ),
        compiler_params=pltpu.CompilerParams(
            dimension_semantics=("parallel",)),
    )(x_flat, m1, s1, m2, s2)

    # (N, H, W*Cout) -> (N, H, W, Cout) -> NCHW
    return jnp.transpose(out_flat.reshape(N, H, W, Cout), (0, 3, 1, 2))


def make_conv_bn_params(key, ch_in, ch_out):
    """Deterministic params mimicking Conv2d(ch_in, ch_out, 3) + BatchNorm2d(ch_out)."""
    k_w, k_b, k_g, k_be, k_m, k_v = jax.random.split(key, 6)
    # PyTorch weight layout (Cout, Cin, 3, 3) -> HWIO.
    w_oihw = jax.random.normal(k_w, (ch_out, ch_in, 3, 3), jnp.float32) * 0.1
    w_hwio = jnp.transpose(w_oihw, (2, 3, 1, 0))
    bias = jax.random.normal(k_b, (ch_out,), jnp.float32) * 0.05
    gamma = 1.0 + 0.1 * jax.random.normal(k_g, (ch_out,), jnp.float32)
    beta = 0.05 * jax.random.normal(k_be, (ch_out,), jnp.float32)
    running_mean = 0.1 * jax.random.normal(k_m, (ch_out,), jnp.float32)
    running_var = 1.0 + 0.1 * jax.nn.softplus(
        jax.random.normal(k_v, (ch_out,), jnp.float32))
    eps = 1e-5
    scale = gamma / jnp.sqrt(running_var + eps)
    shift = (bias - running_mean) * scale + beta
    return w_hwio, scale, shift


def _reference_conv_bn_relu(x_nhwc, w_hwio, scale, shift):
    y = jax.lax.conv_general_dilated(
        x_nhwc, w_hwio, window_strides=(1, 1), padding="SAME",
        dimension_numbers=("NHWC", "HWIO", "NHWC"))
    y = y * scale[None, None, None, :] + shift[None, None, None, :]
    return jnp.maximum(y, 0.0)


if __name__ == "__main__":
    key = jax.random.PRNGKey(0)
    k_x, k_p1, k_p2 = jax.random.split(key, 3)

    N, C_IN, C_OUT, H, W = 2, 4, 8, 16, 16
    x = jax.random.normal(k_x, (N, C_IN, H, W), jnp.float32)  # NCHW, like PyTorch

    params1 = make_conv_bn_params(k_p1, C_IN, C_OUT)
    params2 = make_conv_bn_params(k_p2, C_OUT, C_OUT)

    out = conv_block_forward(x, params1, params2)
    out = jax.block_until_ready(out)
    assert out.shape == (N, C_OUT, H, W), out.shape

    # Sanity check against a pure-JAX reference of the same math.
    x_nhwc = jnp.transpose(x, (0, 2, 3, 1))
    ref = _reference_conv_bn_relu(x_nhwc, *params1)
    ref = _reference_conv_bn_relu(ref, *params2)
    ref = jnp.transpose(ref, (0, 3, 1, 2))
    assert jnp.allclose(out, ref, atol=1e-4, rtol=1e-4), float(
        jnp.max(jnp.abs(out - ref)))

    print("KERNEL_OK")
</pallas_src>

<mosaic_0001>
module attributes {stable_mosaic.version = 11 : i64} {
  func.func @fused_conv_block_kernel(%arg0: i32, %arg1: memref<1x16x64xf32, #tpu.memory_space<vmem>>, %arg2: memref<3x64x128xf32, #tpu.memory_space<vmem>>, %arg3: memref<1x128xf32, #tpu.memory_space<vmem>>, %arg4: memref<3x128x128xf32, #tpu.memory_space<vmem>>, %arg5: memref<1x128xf32, #tpu.memory_space<vmem>>, %arg6: memref<1x16x128xf32, #tpu.memory_space<vmem>>, %arg7: memref<18x64xf32, #tpu.memory_space<vmem>>, %arg8: memref<18x128xf32, #tpu.memory_space<vmem>>) attributes {dimension_semantics = [#tpu.dimension_semantics<parallel>], iteration_bounds = array<i64: 2>, scalar_prefetch = 0 : i64, scratch_operands = 2 : i64, tpu.core_type = #tpu.core_type<tc>, window_params = [{transform_indices = @transform_0, window_bounds = array<i64: 1, 16, 64>}, {pipeline_mode = #tpu.pipeline_mode<synchronous>, transform_indices = @transform_1, window_bounds = array<i64: 3, 64, 128>}, {pipeline_mode = #tpu.pipeline_mode<synchronous>, transform_indices = @transform_2, window_bounds = array<i64: 1, 128>}, {pipeline_mode = #tpu.pipeline_mode<synchronous>, transform_indices = @transform_3, window_bounds = array<i64: 3, 128, 128>}, {pipeline_mode = #tpu.pipeline_mode<synchronous>, transform_indices = @transform_4, window_bounds = array<i64: 1, 128>}, {transform_indices = @transform_5, window_bounds = array<i64: 1, 16, 128>}]} {
    %cst = arith.constant 0.000000e+00 : f32
    %0 = vector.broadcast %cst : f32 to vector<1x64xf32>
    %cst_0 = arith.constant 0.000000e+00 : f32
    %1 = vector.broadcast %cst_0 : f32 to vector<1x128xf32>
    %c0 = arith.constant 0 : index
    %c0_1 = arith.constant 0 : index
    %2 = vector.load %arg7[%c0, %c0_1] : memref<18x64xf32, #tpu.memory_space<vmem>>, vector<1x64xf32>
    tpu.vector_store %arg7[%c0, %c0_1], %0 {strides = array<i32>} : memref<18x64xf32, #tpu.memory_space<vmem>>, vector<1x64xf32>,
    %c17 = arith.constant 17 : index
    %c0_2 = arith.constant 0 : index
    %3 = vector.load %arg7[%c17, %c0_2] : memref<18x64xf32, #tpu.memory_space<vmem>>, vector<1x64xf32>
    tpu.vector_store %arg7[%c17, %c0_2], %0 {strides = array<i32>} : memref<18x64xf32, #tpu.memory_space<vmem>>, vector<1x64xf32>,
    %c0_3 = arith.constant 0 : index
    %c0_4 = arith.constant 0 : index
    %c0_5 = arith.constant 0 : index
    %4 = vector.load %arg1[%c0_3, %c0_4, %c0_5] : memref<1x16x64xf32, #tpu.memory_space<vmem>>, vector<1x16x64xf32>
    %5 = vector.shape_cast %4 : vector<1x16x64xf32> to vector<16x64xf32>
    %c1 = arith.constant 1 : index
    %c0_6 = arith.constant 0 : index
    %6 = vector.load %arg7[%c1, %c0_6] : memref<18x64xf32, #tpu.memory_space<vmem>>, vector<16x64xf32>
    tpu.vector_store %arg7[%c1, %c0_6], %5 {strides = array<i32>} : memref<18x64xf32, #tpu.memory_space<vmem>>, vector<16x64xf32>,
    %cst_7 = arith.constant 0.000000e+00 : f32
    %7 = vector.broadcast %cst_7 : f32 to vector<16x128xf32>
    %c0_8 = arith.constant 0 : index
    %c0_9 = arith.constant 0 : index
    %8 = vector.load %arg7[%c0_8, %c0_9] : memref<18x64xf32, #tpu.memory_space<vmem>>, vector<16x64xf32>
    %c0_10 = arith.constant 0 : index
    %c0_11 = arith.constant 0 : index
    %c0_12 = arith.constant 0 : index
    %9 = vector.load %arg2[%c0_10, %c0_11, %c0_12] : memref<3x64x128xf32, #tpu.memory_space<vmem>>, vector<1x64x128xf32>
    %10 = vector.shape_cast %9 : vector<1x64x128xf32> to vector<64x128xf32>
    %cst_13 = arith.constant dense<0.000000e+00> : vector<16x128xf32>
    %11 = tpu.matmul %8, %10, %cst_13 {dimension_numbers = #tpu.dot_dimension_numbers<[1], [0], [0], [1], [0, 0, 1, 1], [], []>} : vector<16x64xf32>, vector<64x128xf32>, vector<16x128xf32> -> vector<16x128xf32>
    %12 = arith.addf %7, %11 : vector<16x128xf32>
    %c1_14 = arith.constant 1 : index
    %c0_15 = arith.constant 0 : index
    %13 = vector.load %arg7[%c1_14, %c0_15] : memref<18x64xf32, #tpu.memory_space<vmem>>, vector<16x64xf32>
    %c1_16 = arith.constant 1 : index
    %c0_17 = arith.constant 0 : index
    %c0_18 = arith.constant 0 : index
    %14 = vector.load %arg2[%c1_16, %c0_17, %c0_18] : memref<3x64x128xf32, #tpu.memory_space<vmem>>, vector<1x64x128xf32>
    %15 = vector.shape_cast %14 : vector<1x64x128xf32> to vector<64x128xf32>
    %cst_19 = arith.constant dense<0.000000e+00> : vector<16x128xf32>
    %16 = tpu.matmul %13, %15, %cst_19 {dimension_numbers = #tpu.dot_dimension_numbers<[1], [0], [0], [1], [0, 0, 1, 1], [], []>} : vector<16x64xf32>, vector<64x128xf32>, vector<16x128xf32> -> vector<16x128xf32>
    %17 = arith.addf %12, %16 : vector<16x128xf32>
    %c2 = arith.constant 2 : index
    %c0_20 = arith.constant 0 : index
    %18 = vector.load %arg7[%c2, %c0_20] : memref<18x64xf32, #tpu.memory_space<vmem>>, vector<16x64xf32>
    %c2_21 = arith.constant 2 : index
    %c0_22 = arith.constant 0 : index
    %c0_23 = arith.constant 0 : index
    %19 = vector.load %arg2[%c2_21, %c0_22, %c0_23] : memref<3x64x128xf32, #tpu.memory_space<vmem>>, vector<1x64x128xf32>
    %20 = vector.shape_cast %19 : vector<1x64x128xf32> to vector<64x128xf32>
    %cst_24 = arith.constant dense<0.000000e+00> : vector<16x128xf32>
    %21 = tpu.matmul %18, %20, %cst_24 {dimension_numbers = #tpu.dot_dimension_numbers<[1], [0], [0], [1], [0, 0, 1, 1], [], []>} : vector<16x64xf32>, vector<64x128xf32>, vector<16x128xf32> -> vector<16x128xf32>
    %22 = arith.addf %17, %21 : vector<16x128xf32>
    %c0_25 = arith.constant 0 : index
    %c0_26 = arith.constant 0 : index
    %23 = vector.load %arg3[%c0_25, %c0_26] : memref<1x128xf32, #tpu.memory_space<vmem>>, vector<1x128xf32>
    %24 = vector.broadcast %23 : vector<1x128xf32> to vector<16x128xf32>
    %25 = arith.addf %22, %24 : vector<16x128xf32>
    %cst_27 = arith.constant 0.000000e+00 : f32
    %26 = vector.broadcast %cst_27 : f32 to vector<16x128xf32>
    %27 = arith.maximumf %25, %26 : vector<16x128xf32>
    %c0_28 = arith.constant 0 : index
    %c0_29 = arith.constant 0 : index
    %28 = vector.load %arg8[%c0_28, %c0_29] : memref<18x128xf32, #tpu.memory_space<vmem>>, vector<1x128xf32>
    tpu.vector_store %arg8[%c0_28, %c0_29], %1 {strides = array<i32>} : memref<18x128xf32, #tpu.memory_space<vmem>>, vector<1x128xf32>,
    %c17_30 = arith.constant 17 : index
    %c0_31 = arith.constant 0 : index
    %29 = vector.load %arg8[%c17_30, %c0_31] : memref<18x128xf32, #tpu.memory_space<vmem>>, vector<1x128xf32>
    tpu.vector_store %arg8[%c17_30, %c0_31], %1 {strides = array<i32>} : memref<18x128xf32, #tpu.memory_space<vmem>>, vector<1x128xf32>,
    %c1_32 = arith.constant 1 : index
    %c0_33 = arith.constant 0 : index
    %30 = vector.load %arg8[%c1_32, %c0_33] : memref<18x128xf32, #tpu.memory_space<vmem>>, vector<16x128xf32>
    tpu.vector_store %arg8[%c1_32, %c0_33], %27 {strides = array<i32>} : memref<18x128xf32, #tpu.memory_space<vmem>>, vector<16x128xf32>,
    %cst_34 = arith.constant 0.000000e+00 : f32
    %31 = vector.broadcast %cst_34 : f32 to vector<16x128xf32>
    %c0_35 = arith.constant 0 : index
    %c0_36 = arith.constant 0 : index
    %32 = vector.load %arg8[%c0_35, %c0_36] : memref<18x128xf32, #tpu.memory_space<vmem>>, vector<16x128xf32>
    %c0_37 = arith.constant 0 : index
    %c0_38 = arith.constant 0 : index
    %c0_39 = arith.constant 0 : index
    %33 = vector.load %arg4[%c0_37, %c0_38, %c0_39] : memref<3x128x128xf32, #tpu.memory_space<vmem>>, vector<1x128x128xf32>
    %34 = vector.shape_cast %33 : vector<1x128x128xf32> to vector<128x128xf32>
    %cst_40 = arith.constant dense<0.000000e+00> : vector<16x128xf32>
    %35 = tpu.matmul %32, %34, %cst_40 {dimension_numbers = #tpu.dot_dimension_numbers<[1], [0], [0], [1], [0, 0, 1, 1], [], []>} : vector<16x128xf32>, vector<128x128xf32>, vector<16x128xf32> -> vector<16x128xf32>
    %36 = arith.addf %31, %35 : vector<16x128xf32>
    %c1_41 = arith.constant 1 : index
    %c0_42 = arith.constant 0 : index
    %37 = vector.load %arg8[%c1_41, %c0_42] : memref<18x128xf32, #tpu.memory_space<vmem>>, vector<16x128xf32>
    %c1_43 = arith.constant 1 : index
    %c0_44 = arith.constant 0 : index
    %c0_45 = arith.constant 0 : index
    %38 = vector.load %arg4[%c1_43, %c0_44, %c0_45] : memref<3x128x128xf32, #tpu.memory_space<vmem>>, vector<1x128x128xf32>
    %39 = vector.shape_cast %38 : vector<1x128x128xf32> to vector<128x128xf32>
    %cst_46 = arith.constant dense<0.000000e+00> : vector<16x128xf32>
    %40 = tpu.matmul %37, %39, %cst_46 {dimension_numbers = #tpu.dot_dimension_numbers<[1], [0], [0], [1], [0, 0, 1, 1], [], []>} : vector<16x128xf32>, vector<128x128xf32>, vector<16x128xf32> -> vector<16x128xf32>
    %41 = arith.addf %36, %40 : vector<16x128xf32>
    %c2_47 = arith.constant 2 : index
    %c0_48 = arith.constant 0 : index
    %42 = vector.load %arg8[%c2_47, %c0_48] : memref<18x128xf32, #tpu.memory_space<vmem>>, vector<16x128xf32>
    %c2_49 = arith.constant 2 : index
    %c0_50 = arith.constant 0 : index
    %c0_51 = arith.constant 0 : index
    %43 = vector.load %arg4[%c2_49, %c0_50, %c0_51] : memref<3x128x128xf32, #tpu.memory_space<vmem>>, vector<1x128x128xf32>
    %44 = vector.shape_cast %43 : vector<1x128x128xf32> to vector<128x128xf32>
    %cst_52 = arith.constant dense<0.000000e+00> : vector<16x128xf32>
    %45 = tpu.matmul %42, %44, %cst_52 {dimension_numbers = #tpu.dot_dimension_numbers<[1], [0], [0], [1], [0, 0, 1, 1], [], []>} : vector<16x128xf32>, vector<128x128xf32>, vector<16x128xf32> -> vector<16x128xf32>
    %46 = arith.addf %41, %45 : vector<16x128xf32>
    %c0_53 = arith.constant 0 : index
    %c0_54 = arith.constant 0 : index
    %47 = vector.load %arg5[%c0_53, %c0_54] : memref<1x128xf32, #tpu.memory_space<vmem>>, vector<1x128xf32>
    %48 = vector.broadcast %47 : vector<1x128xf32> to vector<16x128xf32>
    %49 = arith.addf %46, %48 : vector<16x128xf32>
    %cst_55 = arith.constant 0.000000e+00 : f32
    %50 = vector.broadcast %cst_55 : f32 to vector<16x128xf32>
    %51 = arith.maximumf %49, %50 : vector<16x128xf32>
    %52 = vector.shape_cast %51 : vector<16x128xf32> to vector<1x16x128xf32>
    %c0_56 = arith.constant 0 : index
    %c0_57 = arith.constant 0 : index
    %c0_58 = arith.constant 0 : index
    %53 = vector.load %arg6[%c0_56, %c0_57, %c0_58] : memref<1x16x128xf32, #tpu.memory_space<vmem>>, vector<1x16x128xf32>
    tpu.vector_store %arg6[%c0_56, %c0_57, %c0_58], %52 {strides = array<i32>} : memref<1x16x128xf32, #tpu.memory_space<vmem>>, vector<1x16x128xf32>,
    return
  }
  func.func @transform_0(%arg0: i32) -> (i32, i32, i32) {
    %c0_i32 = arith.constant 0 : i32
    %c0_i32_0 = arith.constant 0 : i32
    %c0_i32_1 = arith.constant 0 : i32
    return %arg0, %c0_i32, %c0_i32_0 : i32, i32, i32
  }
  func.func @transform_1(%arg0: i32) -> (i32, i32, i32) {
    %c0_i32 = arith.constant 0 : i32
    %c0_i32_0 = arith.constant 0 : i32
    %c0_i32_1 = arith.constant 0 : i32
    %c0_i32_2 = arith.constant 0 : i32
    return %c0_i32, %c0_i32_0, %c0_i32_1 : i32, i32, i32
  }
  func.func @transform_2(%arg0: i32) -> (i32, i32) {
    %c0_i32 = arith.constant 0 : i32
    %c0_i32_0 = arith.constant 0 : i32
    %c0_i32_1 = arith.constant 0 : i32
    return %c0_i32, %c0_i32_0 : i32, i32
  }
  func.func @transform_3(%arg0: i32) -> (i32, i32, i32) {
    %c0_i32 = arith.constant 0 : i32
    %c0_i32_0 = arith.constant 0 : i32
    %c0_i32_1 = arith.constant 0 : i32
    %c0_i32_2 = arith.constant 0 : i32
    return %c0_i32, %c0_i32_0, %c0_i32_1 : i32, i32, i32
  }
  func.func @transform_4(%arg0: i32) -> (i32, i32) {
    %c0_i32 = arith.constant 0 : i32
    %c0_i32_0 = arith.constant 0 : i32
    %c0_i32_1 = arith.constant 0 : i32
    return %c0_i32, %c0_i32_0 : i32, i32
  }
  func.func @transform_5(%arg0: i32) -> (i32, i32, i32) {
    %c0_i32 = arith.constant 0 : i32
    %c0_i32_0 = arith.constant 0 : i32
    %c0_i32_1 = arith.constant 0 : i32
    return %arg0, %c0_i32, %c0_i32_0 : i32, i32, i32
  }
}

</mosaic_0001>

<bundles_post_ra>
// kernel: tpu_custom_call.1
= control target key start
LH: loop header
LB: loop body
LE: loop exit
PB: predicated region body
PF: predicated region fallthrough
CT: control target
= control target key end

     0   :  { %10 = vsyncpa [#allocation5], 0  ;;  %s1131_s0 = inlined_call_operand.hbm [shape: f32[2,16,64], index: 0, kind: input, shape index: {}]   ;;  %s1132_s1 = inlined_call_operand.hbm [shape: f32[3,64,128], index: 1, kind: input, shape index: {}]   ;;  %s1133_s2 = inlined_call_operand.vmem [shape: f32[1,128], index: 2, kind: input, shape index: {}]   ;;  %s1134_s3 = inlined_call_operand.hbm [shape: f32[3,128,128], index: 3, kind: input, shape index: {}]   ;;  %s1135_s4 = inlined_call_operand.vmem [shape: f32[1,128], index: 4, kind: input, shape index: {}]   ;;  %s1136_s5 = inlined_call_operand.hbm [shape: f32[2,16,128], index: 5, kind: output, shape index: {}]  }
   0x1   :  { %12 = vsyncpa [#allocation5 + $0x1], 0 }
   0x2   :  { %13 = vsyncpa [#allocation8], 0 }
   0x3   :  { %14 = vsyncpa [#allocation6], 0 }
   0x4   :  { %16 = vsyncpa [#allocation6 + $0x1], 0  ;;  %s963_s18 = smov 0   ;;  %s965_s19 = smov 0  }
   0x5   :  { %s967_s20 = smov 0   ;;  %s969_s21 = smov 0  }
   0x6 LB: > { %s984_s22 = sadd.s32 4294967295, %s924_s21   ;;  %s664_s23 = sadd.s32 4294967294, %s924_s21   ;;  %s924_s21 = sphi %s969_s21, %s1148_s21   ;;  %s920_s20 = sphi %s967_s20, %s1147_s20   ;;  %s916_s19 = sphi %s965_s19, %s1146_s19   ;;  %s912_s18 = sphi %s963_s18, %s1145_s18  }
   0x7   : > { %p42_p0 = scmp.ne.s32.totalorder %s916_s19, %s912_s18  ;;  %p43_p1 = scmp.eq.s32.totalorder %s984_s22, 0 }
   0x8   : > { %p150_p2 = scmp.eq.s32.totalorder %s984_s22, 1  ;;  %p156_p3 = scmp.eq.s32.totalorder %s664_s23, 1 }
   0x9   : > { %p993_p4 = por %p43_p1, %p42_p0  ;;  %p665_p5 = scmp.ge.s32.totalorder %s924_s21, 1 }
   0xa   : > { %p998_p6 = por %p156_p3, %p42_p0  ;;  %p163_p7 = scmp.lt.s32.totalorder %s924_s21, 3 }
   0xb   : > { %s174_s28 = sshll.u32 %s1132_s1, 4  ;;  %s926_s30 = smov [#allocation7]   ;;  %s175_s28 = int_to_ptr.hbm [resolvable:$true] %s174_s28 }
   0xc   : > { %p1006_p8 = pnand %p665_p5, %p163_p7  ;;  %s176_s6 = sshll.u32 %s926_s30, 4  ;;  %s177_s6 = int_to_ptr.vmem [resolvable:$true] %s176_s6 }
   0xd   : > { %s191_s9 = sshll.u32 %s1134_s3, 4  ;;  %s1137_s10 = smov 128   ;;  %s192_s9 = int_to_ptr.hbm [resolvable:$true] %s191_s9 }
   0xe   : > { %p702_p9 = pneg %p1006_p8  ;;  %s928_s11 = smov 8  }
   0xf   : > { %s929_s12 = smov [#allocation9]   ;;  %s1025_s14 = sadd.s32 1, %s924_s21  }
  0x10   : > { %p703_p10 = pnand %p702_p9, %p43_p1  ;;  %s193_s13 = sshll.u32 %s929_s12, 4  ;;  %s194_s13 = int_to_ptr.vmem [resolvable:$true] %s193_s13 }
  0x11   : > { %s29_s15 = sadd.s32 1, %s920_s20  ;;  %s26_s16 = ssub.s32 %s924_s21, %s1025_s14 }
  0x12   : > { %705 = dma.hbm_to_vmem [thread:$0]  (!%p703_p10), %s175_s28, 3072, %s177_s6, [#allocation8], %s1137_s10, %s1137_s10, %s928_s11  }
  0x13   : > { %708 = dma.hbm_to_vmem [thread:$0]  (!%p703_p10), %s192_s9, 6144, %s194_s13, [#allocation8], %s1137_s10, %s1137_s10, %s928_s11  }
  0x14   : > { %p36_p12 = scmp.ne.s32.totalorder %s920_s20, %s916_s19  ;;  %p27_p13 = scmp.eq.s32.totalorder %s26_s16, 0 }
  0x15   : > { %p37_p0 = scmp.eq.s32.totalorder %s924_s21, 0  ;;  %p719_p5 = scmp.lt.s32.totalorder %s924_s21, 2 }
  0x16   : > { %p1035_p3 = por %p150_p2, %p36_p12  ;;  %s210_s26 = sand.u32 1, %s920_s20  }
  0x17   : > { %s1041_s23 = scalar_select %p27_p13, %s920_s20, %s29_s15  }
  0x18   : > { %p38_p7 = por %p37_p0, %p36_p12  ;;  %s669_s27 = sshll.u32 %s210_s26, 4 }
  0x19   : > { %s688_s28 = sshll.u32 %s924_s21, 4  ;;  %s214_s8 = scalar_lea.vmem [#allocation4], %s669_s27 }
  0x1a   : > { %s219_s7 = scalar_lea.hbm %s1131_s0, %s688_s28  ;;  %s222_s9 = sshll.u32 %s214_s8, 4  ;;  %s223_s9 = int_to_ptr.vmem [resolvable:$true] %s222_s9 }
  0x1b   : > { %s220_s12 = sshll.u32 %s219_s7, 4  ;;  %p1048_p2 = pnand %p719_p5, %p38_p7  ;;  %s221_s12 = int_to_ptr.hbm [resolvable:$true] %s220_s12 }
  0x1c   : > { %s211_s15 = scalar_lea.sflag [#allocation5], %s210_s26  ;;  %s824_s16 = sshra.s32 %s221_s12, 4  ;;  %s825_s16 = int_to_ptr.hbm [resolvable:$true] %s824_s16 }
  0x1d   : > { %s826_s10 = scalar_lea.hbm %s825_s16, 16  ;;  %p828_p10 = pneg %p1048_p2 }
  0x1e   : > { %p827_p9 = scmp.ne.s32.totalorder %s825_s16, %s826_s10  ;;  %s831_s30 = scalar_lea.hbm %s1131_s0, 32 }
  0x1f   : > { %p832_p0 = scmp.lt.s32.totalorder %s825_s16, %s1131_s0  ;;  %p833_p5 = scmp.lt.s32.totalorder %s831_s30, %s826_s10 }
  0x20   : > { %p829_p12 = pnand %p828_p10, %p827_p9 }
  0x21   : > { %p834_p7 = por %p833_p5, %p832_p0 }
  0x22   : > { %p830_p13 = pneg %p829_p12 }
  0x24   : > { %p835_p11 = pnand %p834_p7, %p830_p13 }
  0x26   : > { %838 = shalt.err (!%p835_p11)
}
  0x27   : > { %s1143_s26 = smov 128   ;;  %234 = sbr.rel (%p1006_p8) target bundleno = 378 (0x17a), region = 40 }
  0x28   : > { %712 = dma.hbm_to_vmem [thread:$0]  (!%p1048_p2), %s221_s12, 256, %s223_s9, %s211_s15, %s1143_s26, %s1143_s26, %s928_s11  }
  0x29   : > { %s1068_s8 = sand.u32 (!%p1006_p8), 1, %s916_s19  }
  0x2a   : > { %s673_s10 = sshll.u32 (!%p1006_p8), %s1068_s8, 4  ;;  %s237_s16 = scalar_lea.sflag (!%p1006_p8), [#allocation5], %s1068_s8 }
  0x2b   : > { %s240_s28 = scalar_lea.vmem (!%p1006_p8), [#allocation4], %s673_s10 }
  0x2c   : > { %899 = dma.done.wait (%p993_p4), %s237_s16, 256  }
  0x2d   : > { %901 = vsyncadd (%p993_p4), %s237_s16, 4294967040 }
  0x2e   : > { %903 = dma.done.wait (%p43_p1), [#allocation8], 9216  }
  0x2f   : > { %905 = vsyncadd (%p43_p1), [#allocation8], 4294958080  ;;  %vm278_vm0 = vcmask 516096   ;;  %v930_v0 = vmov 0.0   ;;  %v306_v1 = vld [vmem:[#allocation7 + $0x78] sm:$0xff]  ;;  %v305_v2 = vld [vmem:[#allocation7 + $0x70] sm:$0xff] }
  0x30   : > { %279 = vst.msk [vmem:[#allocation2] sm:$0x1] %vm278_vm0, %v930_v0  ;;  %321 = vmatpush.msra.mxu2 %v306_v1  ;;  %v295_v3 = vld [vmem:[#allocation7 + $0x38] sm:$0xff]  ;;  %v304_v4 = vld [vmem:[#allocation7 + $0x68] sm:$0xff]  ;;  %v294_v5 = vld [vmem:[#allocation7 + $0x30] sm:$0xff]  ;;  %vm283_vm1 = vcmask 523264  }
  0x31   : > { %280 = vst.msk [vmem:[#allocation2 + $0x11] sm:$0x1] %vm278_vm0, %v930_v0  ;;  %350 = vmatpush.msra.mxu1 %v295_v3  ;;  %v293_v6 = vld [vmem:[#allocation7 + $0x28] sm:$0xff]  ;;  %v303_v7 = vld [vmem:[#allocation7 + $0x60] sm:$0xff]  ;;  %v302_v11 = vld [vmem:[#allocation7 + $0x58] sm:$0xff]  ;;  %s689_s12 = sshll.u32 %s984_s22, 4 }
  0x32   : > { %415 = vst [vmem:[#allocation3] sm:$0x1] %v930_v0  ;;  %322 = vmatpush.msra.mxu2 %v305_v2  ;;  %v281_v8 = vld [vmem:[%s240_s28] sm:$0xff]  ;;  %v282_v9 = vld [vmem:[%s240_s28 + $0x8] sm:$0xff]  ;;  %s568_s27 = scalar_lea.hbm %s1136_s5, %s689_s12  ;;  %s277_s30 = scalar_lea.vmem [#allocation10], %s673_s10 }
  0x33   : > { %416 = vst [vmem:[#allocation3 + $0x11] sm:$0x1] %v930_v0  ;;  %351 = vmatpush.msra.mxu1 %v294_v5  ;;  %v292_v10 = vld [vmem:[#allocation7 + $0x20] sm:$0xff]  ;;  %v291_v12 = vld [vmem:[#allocation7 + $0x18] sm:$0xff]  ;;  %v301_v13 = vld [vmem:[#allocation7 + $0x50] sm:$0xff]  ;;  %s569_s6 = sshll.u32 %s277_s30, 4  ;;  %s570_s6 = int_to_ptr.vmem [resolvable:$true] %s569_s6 }
  0x34   : > { %323 = vmatpush.msra.mxu2 %v304_v4  ;;  %284 = vst.msk [vmem:[#allocation2 + $0x1] sm:$0xff] %vm283_vm1, %v281_v8  ;;  %v290_v14 = vld [vmem:[#allocation7 + $0x10] sm:$0xff]  ;;  %v300_v15 = vld [vmem:[#allocation7 + $0x48] sm:$0xff]  ;;  %v299_v17 = vld [vmem:[#allocation7 + $0x40] sm:$0xff]  ;;  %s571_s7 = sshll.u32 %s568_s27, 4  ;;  %s557_s22 = scalar_lea.sflag [#allocation6], %s1068_s8  ;;  %s572_s7 = int_to_ptr.hbm [resolvable:$true] %s571_s7 }
  0x35   : > { %352 = vmatpush.msra.mxu1 %v293_v6  ;;  %285 = vst.msk [vmem:[#allocation2 + $0x9] sm:$0xff] %vm283_vm1, %v282_v9  ;;  %v289_v16 = vld [vmem:[#allocation7 + $0x8] sm:$0xff]  ;;  %v288_v19 = vld [vmem:[#allocation7] sm:$0xff]  ;;  %v375_v20 = vld [vmem:[#allocation7 + $0xb8] sm:$0xff]  ;;  %s868_s26 = sshra.s32 %s572_s7, 4  ;;  %s874_s24 = scalar_lea.hbm %s1136_s5, 32  ;;  %s869_s26 = int_to_ptr.hbm [resolvable:$true] %s868_s26 }
  0x36   : > { %324 = vmatpush.msra.mxu2 %v303_v7  ;;  %v374_v22 = vld [vmem:[#allocation7 + $0xb0] sm:$0xff]  ;;  %v373_v23 = vld [vmem:[#allocation7 + $0xa8] sm:$0xff]  ;;  %v372_v24 = vld [vmem:[#allocation7 + $0xa0] sm:$0xff]  ;;  %s870_s16 = scalar_lea.hbm %s869_s26, 16  ;;  %p875_p11 = scmp.lt.s32.totalorder %s869_s26, %s1136_s5 }
  0x37   : > { %353 = vmatpush.msra.mxu1 %v292_v10  ;;  %v371_v26 = vld [vmem:[#allocation7 + $0x98] sm:$0xff]  ;;  %v370_v28 = vld [vmem:[#allocation7 + $0x90] sm:$0xff]  ;;  %v369_v29 = vld [vmem:[#allocation7 + $0x88] sm:$0xff]  ;;  %p871_p1 = scmp.ne.s32.totalorder %s869_s26, %s870_s16  ;;  %p876_p2 = scmp.lt.s32.totalorder %s874_s24, %s870_s16 }
  0x38   : > { %325 = vmatpush.msra.mxu2 %v302_v11  ;;  %v368_v30 = vld [vmem:[#allocation7 + $0x80] sm:$0xff]  ;;  %v455_v33 = vld [vmem:[#allocation9 + $0xf8] sm:$0xff]  ;;  %v454_v34 = vld [vmem:[#allocation9 + $0xf0] sm:$0xff] }
  0x39   : > { %354 = vmatpush.msra.mxu1 %v291_v12  ;;  %456 = vmatpush.msra.mxu3 %v455_v33  ;;  %v453_v35 = vld [vmem:[#allocation9 + $0xe8] sm:$0xff]  ;;  %v452_v36 = vld [vmem:[#allocation9 + $0xe0] sm:$0xff]  ;;  %v436_v37 = vld [vmem:[#allocation9 + $0x78] sm:$0xff]  ;;  %p872_p4 = pnand %p871_p1, %p1035_p3  ;;  %p877_p9 = por %p876_p2, %p875_p11 }
  0x3a   : > { %326 = vmatpush.msra.mxu2 %v301_v13  ;;  %v451_v38 = vld [vmem:[#allocation9 + $0xd8] sm:$0xff]  ;;  %479 = vmatpush.msra.mxu0 %v436_v37  ;;  %v435_v39 = vld [vmem:[#allocation9 + $0x70] sm:$0xff]  ;;  %v434_v40 = vld [vmem:[#allocation9 + $0x68] sm:$0xff] }
  0x3b   : > { %355 = vmatpush.msra.mxu1 %v290_v14  ;;  %v296_v18 = vld [vmem:[#allocation2 + $0x1] sm:$0xff]  ;;  %457 = vmatpush.msra.mxu3 %v454_v34  ;;  %v433_v42 = vld [vmem:[#allocation9 + $0x60] sm:$0xff]  ;;  %v449_v43 = vld [vmem:[#allocation9 + $0xc8] sm:$0xff]  ;;  %p873_p8 = pneg %p872_p4 }
  0x3c   : > { %327 = vmatpush.msra.mxu2 %v300_v15  ;;  %v286_v21 = vld [vmem:[#allocation2] sm:$0xff]  ;;  %v297_v25 = vld [vmem:[#allocation2 + $0x9] sm:$0xff]  ;;  %480 = vmatpush.msra.mxu0 %v435_v39  ;;  %v430_v50 = vld [vmem:[#allocation9 + $0x48] sm:$0xff] }
  0x3d   : > { %356 = vmatpush.msra.mxu1 %v289_v16  ;;  %v287_v27 = vld [vmem:[#allocation2 + $0x8] sm:$0xff]  ;;  %458 = vmatpush.msra.mxu3 %v453_v35  ;;  %v450_v41 = vld [vmem:[#allocation9 + $0xd0] sm:$0xff]  ;;  %v448_v44 = vld [vmem:[#allocation9 + $0xc0] sm:$0xff]  ;;  %p878_p10 = pnand %p877_p9, %p873_p8 }
  0x3e   : > { %328 = vmatpush.msra.mxu2 %v299_v17  ;;  %v365_v31 = vld [vmem:[#allocation2 + $0x2] sm:$0xff]  ;;  %v366_v32 = vld [vmem:[#allocation2 + $0xa] sm:$0xff]  ;;  %481 = vmatpush.msra.mxu0 %v434_v40  ;;  %v518_v51 = vld [vmem:[#allocation9 + $0x168] sm:$0xff] }
  0x3f   : > { %677 = vmatmul.msk.f32.vlgmr.msra.gmra.mxu2 %vm283_vm1, %v296_v18  ;;  %357 = vmatpush.msra.mxu1 %v288_v19  ;;  %v432_v45 = vld [vmem:[#allocation9 + $0x58] sm:$0xff]  ;;  %v431_v48 = vld [vmem:[#allocation9 + $0x50] sm:$0xff]  ;;  %v429_v52 = vld [vmem:[#allocation9 + $0x40] sm:$0xff] }
  0x40   : > { %390 = vmatpush.msrb.mxu2 %v375_v20  ;;  %679 = vmatmul.msk.f32.vlgmr.msra.gmra.mxu1 %vm283_vm1, %v286_v21  ;;  %v520_v46 = vld [vmem:[#allocation9 + $0x178] sm:$0xff]  ;;  %v519_v49 = vld [vmem:[#allocation9 + $0x170] sm:$0xff]  ;;  %v517_v53 = vld [vmem:[#allocation9 + $0x160] sm:$0xff] }
  0x41   : > { %459 = vmatpush.msra.mxu3 %v452_v36  ;;  %482 = vmatpush.msra.mxu0 %v433_v42  ;;  %v447_v47 = vld [vmem:[#allocation9 + $0xb8] sm:$0xff]  ;;  %v446_v54 = vld [vmem:[#allocation9 + $0xb0] sm:$0xff]  ;;  %v445_v55 = vld [vmem:[#allocation9 + $0xa8] sm:$0xff] }
  0x42   : > { %391 = vmatpush.msrb.mxu2 %v374_v22  ;;  %521 = vmatpush.msrb.mxu1 %v520_v46  ;;  %v444_v56 = vld [vmem:[#allocation9 + $0xa0] sm:$0xff]  ;;  %v428_v57 = vld [vmem:[#allocation9 + $0x38] sm:$0xff]  ;;  %v427_v60 = vld [vmem:[#allocation9 + $0x30] sm:$0xff] }
  0x43   : > { %460 = vmatpush.msra.mxu3 %v451_v38  ;;  %483 = vmatpush.msra.mxu0 %v432_v45  ;;  %v516_v58 = vld [vmem:[#allocation9 + $0x158] sm:$0xff]  ;;  %v515_v61 = vld [vmem:[#allocation9 + $0x150] sm:$0xff]  ;;  %v426_v63 = vld [vmem:[#allocation9 + $0x28] sm:$0xff] }
  0x44   : > { %392 = vmatpush.msrb.mxu2 %v373_v23  ;;  %522 = vmatpush.msrb.mxu1 %v519_v49  ;;  %v443_v59 = vld [vmem:[#allocation9 + $0x98] sm:$0xff]  ;;  %v442_v62 = vld [vmem:[#allocation9 + $0x90] sm:$0xff]  ;;  %v514_v0 = vld [vmem:[#allocation9 + $0x148] sm:$0xff] }
  0x45   : > { %461 = vmatpush.msra.mxu3 %v450_v41  ;;  %484 = vmatpush.msra.mxu0 %v431_v48  ;;  %v441_v1 = vld [vmem:[#allocation9 + $0x88] sm:$0xff]  ;;  %v425_v2 = vld [vmem:[#allocation9 + $0x20] sm:$0xff]  ;;  %v424_v5 = vld [vmem:[#allocation9 + $0x18] sm:$0xff] }
  0x46   : > { %393 = vmatpush.msrb.mxu2 %v372_v24  ;;  %523 = vmatpush.msrb.mxu1 %v518_v51  ;;  %v513_v3 = vld [vmem:[#allocation9 + $0x140] sm:$0xff]  ;;  %v512_v6 = vld [vmem:[#allocation9 + $0x138] sm:$0xff]  ;;  %v423_v7 = vld [vmem:[#allocation9 + $0x10] sm:$0xff] }
  0x47   : > { %678 = vmatmul.msk.f32.gmra.mxu2 %vm283_vm1, %v297_v25  ;;  %462 = vmatpush.msra.mxu3 %v449_v43  ;;  %v440_v4 = vld [vmem:[#allocation9 + $0x80] sm:$0xff]  ;;  %v511_v8 = vld [vmem:[#allocation9 + $0x130] sm:$0xff]  ;;  %v422_v9 = vld [vmem:[#allocation9 + $0x8] sm:$0xff] }
  0x48   : > { %394 = vmatpush.msrb.mxu2 %v371_v26  ;;  %680 = vmatmul.msk.f32.gmra.mxu1 %vm283_vm1, %v287_v27  ;;  %v510_v10 = vld [vmem:[#allocation9 + $0x128] sm:$0xff]  ;;  %v421_v11 = vld [vmem:[#allocation9] sm:$0xff]  ;;  %v508_v13 = vld [vmem:[#allocation9 + $0x118] sm:$0xff] }
  0x49   : > { %463 = vmatpush.msra.mxu3 %v448_v44  ;;  %485 = vmatpush.msra.mxu0 %v430_v50  ;;  %v509_v12 = vld [vmem:[#allocation9 + $0x120] sm:$0xff]  ;;  %v507_v14 = vld [vmem:[#allocation9 + $0x110] sm:$0xff]  ;;  %v506_v16 = vld [vmem:[#allocation9 + $0x108] sm:$0xff] }
  0x4a   : > { %395 = vmatpush.msrb.mxu2 %v370_v28  ;;  %524 = vmatpush.msrb.mxu1 %v517_v53  ;;  %v505_v17 = vld [vmem:[#allocation9 + $0x100] sm:$0xff]  ;;  %v762_v21 = vld [vmem:[%s1133_s2] ss:$0 sm:$0xff] }
  0x4b   : > { %464 = vmatpush.msra.mxu3 %v447_v47  ;;  %486 = vmatpush.msra.mxu0 %v429_v52  ;;  %v763_v39 = vld [vmem:[%s1135_s4] ss:$0 sm:$0xff] }
  0x4c   : > { %396 = vmatpush.msrb.mxu2 %v369_v29  ;;  %525 = vmatpush.msrb.mxu1 %v516_v58 }
  0x4d   : > { %465 = vmatpush.msra.mxu3 %v446_v54  ;;  %487 = vmatpush.msra.mxu0 %v428_v57 }
  0x4e   : > { %397 = vmatpush.msrb.mxu2 %v368_v30  ;;  %526 = vmatpush.msrb.mxu1 %v515_v61 }
  0x4f   : > { %681 = vmatmul.msk.f32.vlgmr.msrb.gmra.mxu2 %vm283_vm1, %v365_v31  ;;  %466 = vmatpush.msra.mxu3 %v445_v55 }
  0x50   : > { %488 = vmatpush.msra.mxu0 %v427_v60  ;;  %527 = vmatpush.msrb.mxu1 %v514_v0 }
  0x51   : > { %467 = vmatpush.msra.mxu3 %v444_v56 }
  0x52   : > { %489 = vmatpush.msra.mxu0 %v426_v63  ;;  %528 = vmatpush.msrb.mxu1 %v513_v3 }
  0x53   : > { %468 = vmatpush.msra.mxu3 %v443_v59 }
  0x54   : > { %490 = vmatpush.msra.mxu0 %v425_v2  ;;  %529 = vmatpush.msrb.mxu1 %v512_v6 }
  0x55   : > { %469 = vmatpush.msra.mxu3 %v442_v62 }
  0x56   : > { %491 = vmatpush.msra.mxu0 %v424_v5  ;;  %530 = vmatpush.msrb.mxu1 %v511_v8 }
  0x57   : > { %682 = vmatmul.msk.f32.gmra.mxu2 %vm283_vm1, %v366_v32  ;;  %470 = vmatpush.msra.mxu3 %v441_v1 }
  0x58   : > { %492 = vmatpush.msra.mxu0 %v423_v7  ;;  %531 = vmatpush.msrb.mxu1 %v510_v10 }
  0x59   : > { %471 = vmatpush.msra.mxu3 %v440_v4 }
  0x5a   : > { %493 = vmatpush.msra.mxu0 %v422_v9  ;;  %532 = vmatpush.msrb.mxu1 %v509_v12 }
  0x5c   : > { %494 = vmatpush.msra.mxu0 %v421_v11  ;;  %533 = vmatpush.msrb.mxu1 %v508_v13 }
  0x5e   : > { %534 = vmatpush.msrb.mxu1 %v507_v14 }
  0x60   : > { %535 = vmatpush.msrb.mxu1 %v506_v16 }
  0x62   : > { %536 = vmatpush.msrb.mxu1 %v505_v17 }
  0xbd   : > { %v359_v19 = vpop.f32.mrf.mxu1 }
  0xc2   : > { %v330_v15 = vpop.f32.mrf.mxu2 }
  0xc3   : > { %v360_v20 = vadd.f32 %v359_v19, %v330_v15 }
  0xc5   : > { %v362_v25 = vpop.f32.mrf.mxu1 }
  0xca   : > { %v333_v18 = vpop.f32.mrf.mxu2 }
  0xcb   : > { %v363_v27 = vadd.f32 %v362_v25, %v333_v18 }
  0xd2   : > { %v399_v22 = vpop.f32.mrf.mxu2 }
  0xd3   : > { %v405_v23 = vadd.f32 %v399_v22, %v360_v20 }
  0xd5   : > { %v411_v24 = vadd.f32 %v762_v21, %v405_v23 }
  0xd7   : > { %v413_v26 = vmax.f32 %v411_v24, 0.0 }
  0xd9   : > { %417 = vst [vmem:[#allocation3 + $0x1] sm:$0xff] %v413_v26  ;;  %472 = vmatmul.f32.vlgmr.msra.gmra.mxu3 %v413_v26 }
  0xda   : > { %v402_v28 = vpop.f32.mrf.mxu2 }
  0xdb   : > { %v406_v29 = vadd.f32 %v402_v28, %v363_v27 }
  0xdd   : > { %v412_v30 = vadd.f32 %v762_v21, %v406_v29 }
  0xdf   : > { %v414_v31 = vmax.f32 %v412_v30, 0.0 }
  0xe0   : > { %v419_v32 = vld [vmem:[#allocation3] sm:$0xff] }
  0xe1   : > { %418 = vst [vmem:[#allocation3 + $0x9] sm:$0xff] %v414_v31  ;;  %495 = vmatmul.f32.vlgmr.msra.gmra.mxu0 %v419_v32  ;;  %475 = vmatmul.f32.gmra.mxu3 %v414_v31 }
  0xe8   : > { %v420_v33 = vld [vmem:[#allocation3 + $0x8] sm:$0xff] }
  0xe9   : > { %v502_v34 = vld [vmem:[#allocation3 + $0x2] sm:$0xff]  ;;  %498 = vmatmul.f32.gmra.mxu0 %v420_v33  ;;  %v503_v35 = vld [vmem:[#allocation3 + $0xa] sm:$0xff] }
  0xea   : > { %537 = vmatmul.f32.vlgmr.msrb.gmra.mxu1 %v502_v34 }
  0xf2   : > { %540 = vmatmul.f32.gmra.mxu1 %v503_v35 }
 0x15c   : > { %v473_v37 = vpop.f32.mrf.mxu3 }
 0x15e   : > { %v496_v36 = vpop.f32.mrf.mxu0 }
 0x15f   : > { %v497_v38 = vadd.f32 %v496_v36, %v473_v37 }
 0x164   : > { %v476_v45 = vpop.f32.mrf.mxu3 }
 0x166   : > { %v499_v43 = vpop.f32.mrf.mxu0 }
 0x167   : > { %v538_v40 = vpop.f32.mrf.mxu1  ;;  %v500_v46 = vadd.f32 %v499_v43, %v476_v45 }
 0x168   : > { %v544_v41 = vadd.f32 %v538_v40, %v497_v38 }
 0x16a   : > { %v550_v42 = vadd.f32 %v763_v39, %v544_v41 }
 0x16c   : > { %v552_v44 = vmax.f32 %v550_v42, 0.0 }
 0x16e   : > { %554 = vst [vmem:[%s277_s30] sm:$0xff] %v552_v44 }
 0x16f   : > { %v541_v47 = vpop.f32.mrf.mxu1 }
 0x170   : > { %v545_v48 = vadd.f32 %v541_v47, %v500_v46 }
 0x172   : > { %v551_v49 = vadd.f32 %v763_v39, %v545_v48 }
 0x174   : > { %v553_v50 = vmax.f32 %v551_v49, 0.0 }
 0x176   : > { %555 = vst [vmem:[%s277_s30 + $0x8] sm:$0xff] %v553_v50 }
 0x177   : > { %881 = shalt.err (!%p878_p10)
}
 0x178   : > { %s931_s8 = smov 128   ;;  %s932_s9 = smov 8  }
 0x179   : > { %700 = dma.vmem_to_hbm [thread:$0]  (%p1035_p3), %s570_s6, 256, %s572_s7, %s557_s22, %s931_s8, %s931_s8, %s932_s9  }
 0x17a PF: > { %s586_s12 = sand.u32 1, %s912_s18   ;;  %p1144_p12 = scmp.ge.s32.totalorder %s924_s21, 2 }
 0x17b   : > { %s587_s13 = scalar_lea.sflag [#allocation6], %s586_s12 }
 0x17c   : > { %p714_p13 = pnand %p1144_p12, %p998_p6 }
 0x17e   : > { %p715_p0 = pneg %p714_p13 }
 0x180   : > { %907 = dma.done.wait (%p715_p0), %s587_s13, 256  }
 0x181   : > { %909 = vsyncadd (%p715_p0), %s587_s13, 4294967040  ;;  %p19_p5 = scmp.ge.s32.totalorder %s1025_s14, 4   ;;  %s1145_s18 = smov %s916_s19 }
 0x182   : > { %s1146_s19 = smov %s920_s20  ;;  %s1147_s20 = smov %s1041_s23 }
 0x183   : > { %s1148_s21 = smov %s1025_s14  ;;  %21 = sbr.rel (!%p19_p5) target bundleno = 6 (0x6), region = 97 }
 0x188   :  { %593 = vsyncpa [#allocation5], 1 }
 0x189   :  { %595 = vsyncpa [#allocation5 + $0x1], 1 }
 0x18a   :  { %596 = vsyncpa [#allocation8], 1 }
 0x18b   :  { %597 = vsyncpa [#allocation6], 1 }
 0x18c   :  { %599 = vsyncpa [#allocation6 + $0x1], 1 }

</bundles_post_ra>
